<compile_context>
chip_gen: v6e
topology: v6e:2x2x1
jax: 0.10.0
libtpu: 0.0.40
codegen_flags: <defaults>
</compile_context>

<pallas_src>
import functools

import jax
import jax.numpy as jnp
from jax.experimental import pallas as pl
from jax.experimental.pallas import tpu as pltpu


# ----------------------------- kernel body ---------------------------------
def _make_scale_kernel(compute_dtype):
    def _scale_kernel(scale_ref, x_ref, o_ref):
        # scale_ref: (1,) f32 scalar in SMEM; x/o: (block_rows, lanes) VMEM tiles.
        s = scale_ref[0].astype(compute_dtype)
        o_ref[...] = (x_ref[...].astype(compute_dtype) * s).astype(o_ref.dtype)

    return _scale_kernel


# --------------------------- tiling heuristics ------------------------------
_LANE_CANDIDATES = (4096, 2048, 1024, 512, 256, 128)
_MIN_PALLAS_BYTES = 4 * 1024 * 1024  # below this, a fused XLA multiply always wins
                                     # (and can fuse into adjacent conv-tower ops).


@functools.lru_cache(maxsize=1)
def _tpu_budget():
    """(target_tile_bytes, vmem_limit_bytes), generation-aware.

    v5e/v6e have 128 MiB physical VMEM -> big tiles + 64 MiB scoped VMEM.
    v7x has only 64 MiB per TC -> keep tiles ~4 MiB and scoped VMEM <= 32 MiB.
    Falls back to the conservative (v7x-safe) setting if the query fails.
    """
    try:
        vmem_cap = int(pltpu.get_tpu_info().vmem_capacity_bytes)
    except Exception:  # not on TPU / API unavailable -> be conservative
        vmem_cap = 64 * 1024 * 1024
    if vmem_cap >= 100 * 1024 * 1024:      # v5e / v6e
        return 8 * 1024 * 1024, 64 * 1024 * 1024
    return 4 * 1024 * 1024, 32 * 1024 * 1024   # v7x (or unknown)


def _sublane_pack(dtype) -> int:
    # Sublane packing granularity: f32 -> 8, bf16/f16 -> 16, int8/fp8 -> 32.
    return max(8, 32 // jnp.dtype(dtype).itemsize)


def _choose_block_rows(rows: int, pack: int, target_rows: int) -> int:
    if rows <= target_rows:
        return rows  # full row extent -> always a legal block shape
    # Prefer the largest multiple of `pack` (<= target) that evenly divides
    # `rows`: every grid step is a full, unmasked, lane-dense store.
    r = (target_rows // pack) * pack
    while r >= pack:
        if rows % r == 0:
            return r
        r -= pack
    # Fall back: partial trailing block (Pallas masks it).
    return max(pack, (target_rows // pack) * pack)


# ------------------------------- wrapper ------------------------------------
def scale_forward(
    x: jax.Array,
    scale: jax.Array,
    *,
    out_dtype=None,
    force_pallas: bool = False,
    donate_input: bool = False,
) -> jax.Array:
    """FCOS Scale forward: elementwise multiply of `x` by the scalar `scale`.

    out_dtype:   override the output dtype (default matches PyTorch promotion,
                 i.e. result_type(x.dtype, float32)).  Pass x.dtype (e.g. bf16)
                 to avoid widening the HBM write.
    force_pallas: run the Pallas kernel even for tiny tensors (benchmarks/tests).
    donate_input: alias the output onto the input buffer (requires same dtype).
    """
    orig_shape = x.shape
    scale_f32 = jnp.asarray(scale, jnp.float32).reshape((1,))
    if out_dtype is None:
        # PyTorch semantics: the fp32 parameter promotes the result dtype.
        out_dtype = jnp.result_type(x.dtype, jnp.float32)
    out_dtype = jnp.dtype(out_dtype)

    total = x.size
    if total == 0:
        return jnp.zeros(orig_shape, out_dtype)

    # Compute dtype: native low-precision math only when in==out dtype (less
    # vreg pressure, no cast round-trip); otherwise f32 for full precision.
    if out_dtype == jnp.dtype(x.dtype) and out_dtype.name in ("bfloat16", "float16"):
        compute_dtype = out_dtype
    else:
        compute_dtype = jnp.float32

    def _fused_xla():
        # Preferred path: lets XLA fuse the scalar multiply into its
        # producer/consumer, eliminating the standalone HBM read+write.
        s = scale_f32[0].astype(compute_dtype)
        return (x.astype(compute_dtype) * s).astype(out_dtype)

    # Lane-dense 2D slab layout: last dim a wide multiple of 128 that divides
    # the element count exactly (no pad / slice copy passes).
    lanes = None
    for cand in _LANE_CANDIDATES:
        if total % cand == 0:
            lanes = cand
            break

    in_bytes = total * jnp.dtype(x.dtype).itemsize
    if lanes is None or (not force_pallas and in_bytes < _MIN_PALLAS_BYTES):
        # Tiny tensors, or element count not a multiple of 128: fused XLA wins.
        return _fused_xla()

    rows = total // lanes
    x2d = jnp.reshape(x, (rows, lanes))

    target_tile_bytes, vmem_limit_bytes = _tpu_budget()
    pack = max(_sublane_pack(x.dtype), _sublane_pack(out_dtype))
    max_itemsize = max(jnp.dtype(x.dtype).itemsize, out_dtype.itemsize)
    target_rows = max(pack, (target_tile_bytes // (lanes * max_itemsize)) // pack * pack)
    block_rows = _choose_block_rows(rows, pack, target_rows)

    aliases = {}
    if donate_input and jnp.dtype(x.dtype) == out_dtype:
        aliases = {1: 0}  # x2d (input index 1) aliases the single output

    # TODO(synk): if xprof shows one v7x TensorCore idle, switch this axis to
    # pltpu.CORE_PARALLEL (plain "parallel" has near-zero codegen effect).
    out2d = pl.pallas_call(
        _make_scale_kernel(compute_dtype),
        out_shape=jax.ShapeDtypeStruct((rows, lanes), out_dtype),
        grid=(pl.cdiv(rows, block_rows),),
        in_specs=[
            pl.BlockSpec(memory_space=pltpu.SMEM),                 # scale scalar
            pl.BlockSpec((block_rows, lanes), lambda i: (i, 0)),   # input tile
        ],
        out_specs=pl.BlockSpec((block_rows, lanes), lambda i: (i, 0)),
        compiler_params=pltpu.CompilerParams(
            dimension_semantics=("parallel",),
            vmem_limit_bytes=vmem_limit_bytes,
        ),
        input_output_aliases=aliases,
    )(scale_f32, x2d)

    return jnp.reshape(out2d, orig_shape)


# --------------------------------- demo --------------------------------------
if __name__ == "__main__":
    key = jax.random.PRNGKey(0)
    # NCHW input, consistent with FCOS conv-tower feature maps (small demo shape).
    x = jax.random.normal(key, (2, 4, 16, 16), dtype=jnp.float32)

    # Deterministic parameter init, matching nn.Parameter(FloatTensor([1.0])).
    scale_param = jnp.array([1.0], dtype=jnp.float32)

    # Pallas path (demo tensor is small; heuristic would pick fused XLA otherwise).
    out = jax.block_until_ready(scale_forward(x, scale_param, force_pallas=True))
    ref = x * scale_param[0]
    assert out.shape == x.shape and out.dtype == ref.dtype
    assert jnp.allclose(out, ref, atol=1e-6, rtol=1e-6)

    # Non-trivial scale value (as after training): Pallas path and fused path.
    scale2 = jnp.array([0.731], dtype=jnp.float32)
    out2 = jax.block_until_ready(scale_forward(x, scale2, force_pallas=True))
    assert jnp.allclose(out2, x * scale2[0], atol=1e-6, rtol=1e-6)
    out3 = jax.block_until_ready(scale_forward(x, scale2))
    assert jnp.allclose(out3, x * scale2[0], atol=1e-6, rtol=1e-6)

    # bf16 input with narrow-output override: native bf16 compute path.
    x_bf16 = x.astype(jnp.bfloat16)
    out4 = jax.block_until_ready(
        scale_forward(x_bf16, scale2, out_dtype=jnp.bfloat16, force_pallas=True)
    )
    ref4 = x_bf16 * scale2[0].astype(jnp.bfloat16)
    assert out4.dtype == jnp.bfloat16
    assert jnp.allclose(
        out4.astype(jnp.float32), ref4.astype(jnp.float32), atol=1e-2, rtol=1e-2
    )

    print("KERNEL_OK")
</pallas_src>

<mosaic_0001>
module attributes {stable_mosaic.version = 11 : i64} {
  func.func @_scale_kernel(%arg0: i32, %arg1: memref<1xf32, #tpu.memory_space<smem>>, %arg2: memref<1x2048xf32, #tpu.memory_space<vmem>>, %arg3: memref<1x2048xf32, #tpu.memory_space<vmem>>) attributes {dimension_semantics = [#tpu.dimension_semantics<parallel>], iteration_bounds = array<i64: 1>, scalar_prefetch = 0 : i64, scratch_operands = 0 : i64, tpu.core_type = #tpu.core_type<tc>, window_params = [{transform_indices = @transform_0, window_bounds = array<i64: 1>}, {transform_indices = @transform_1, window_bounds = array<i64: 1, 2048>}, {transform_indices = @transform_2, window_bounds = array<i64: 1, 2048>}]} {
    %c0 = arith.constant 0 : index
    %0 = memref.load %arg1[%c0] : memref<1xf32, #tpu.memory_space<smem>>
    %c0_0 = arith.constant 0 : index
    %c0_1 = arith.constant 0 : index
    %1 = vector.load %arg2[%c0_0, %c0_1] : memref<1x2048xf32, #tpu.memory_space<vmem>>, vector<1x2048xf32>
    %2 = vector.broadcast %0 : f32 to vector<1x2048xf32>
    %3 = arith.mulf %1, %2 : vector<1x2048xf32>
    %c0_2 = arith.constant 0 : index
    %c0_3 = arith.constant 0 : index
    %4 = vector.load %arg3[%c0_2, %c0_3] : memref<1x2048xf32, #tpu.memory_space<vmem>>, vector<1x2048xf32>
    tpu.vector_store %arg3[%c0_2, %c0_3], %3 {strides = array<i32>} : memref<1x2048xf32, #tpu.memory_space<vmem>>, vector<1x2048xf32>,
    return
  }
  func.func @transform_0(%arg0: i32) -> i32 {
    %c0_i32 = arith.constant 0 : i32
    %c0_i32_0 = arith.constant 0 : i32
    return %c0_i32 : i32
  }
  func.func @transform_1(%arg0: i32) -> (i32, i32) {
    %c0_i32 = arith.constant 0 : i32
    %c0_i32_0 = arith.constant 0 : i32
    return %arg0, %c0_i32 : i32, i32
  }
  func.func @transform_2(%arg0: i32) -> (i32, i32) {
    %c0_i32 = arith.constant 0 : i32
    %c0_i32_0 = arith.constant 0 : i32
    return %arg0, %c0_i32 : i32, i32
  }
}

</mosaic_0001>

<bundles_post_ra>
// kernel: tpu_custom_call.1
= control target key start
LH: loop header
LB: loop body
LE: loop exit
PB: predicated region body
PF: predicated region fallthrough
CT: control target
= control target key end

     0   :  { %8 = vsyncpa [#allocation4], 0  ;;  %s120_s0 = inlined_call_operand.<no memory space> [shape: f32[1], index: 0, kind: input, shape index: {}]   ;;  %s121_s1 = inlined_call_operand.hbm [shape: f32[1,2048], index: 1, kind: input, shape index: {}]   ;;  %s122_s2 = inlined_call_operand.hbm [shape: f32[1,2048], index: 2, kind: output, shape index: {}]  }
   0x1   :  { %9 = vsyncpa [#allocation5], 0  ;;  %s94_s9 = smov [#allocation3]  }
   0x2   :  { %s18_s10 = sshll.u32 %s94_s9, 4  ;;  %s19_s10 = int_to_ptr.vmem [resolvable:$true] %s18_s10 }
   0x3   :  { %s58_s11 = scalar_lea.vmem %s19_s10, 256  ;;  %p63_p1 = scmp.lt.s32.totalorder %s19_s10, %s19_s10 }
   0x4   :  { %p59_p0 = scmp.ne.s32.totalorder %s19_s10, %s58_s11  ;;  %p64_p2 = scmp.lt.s32.totalorder %s58_s11, %s58_s11 }
   0x6   :  { %p65_p3 = por %p64_p2, %p63_p1 }
   0x8   :  { %p66_p4 = pnand %p65_p3, %p59_p0 }
   0xa   :  { %69 = shalt.err (!%p66_p4)
}
   0xb   :  { %21 = dma.hbm_to_vmem [thread:$0]  %s121_s1, 256, %s19_s10, [#allocation4]  }
   0xc   :  { %90 = dma.done.wait [#allocation4], 256  }
   0xd   :  { %91 = vsyncadd [#allocation4], 4294967040  ;;  %v28_v0 = vstv %s120_s0  ;;  %s95_s16 = smov [#allocation6]   ;;  %v26_v1 = vld [vmem:[#allocation3] sm:$0xff]  ;;  %v27_v2 = vld [vmem:[#allocation3 + $0x8] sm:$0xff] }
   0xe   :  { %s39_s17 = sshll.u32 %s95_s16, 4  ;;  %v29_v3 = vmul.f32 %v28_v0, %v26_v1  ;;  %v30_v4 = vmul.f32 %v28_v0, %v27_v2  ;;  %s40_s17 = int_to_ptr.vmem [resolvable:$true] %s39_s17 }
   0xf   :  { %s70_s18 = scalar_lea.vmem %s40_s17, 256  ;;  %p75_p6 = scmp.lt.s32.totalorder %s40_s17, %s40_s17 }
  0x10   :  { %31 = vst [vmem:[#allocation6] sm:$0xff] %v29_v3  ;;  %32 = vst [vmem:[#allocation6 + $0x8] sm:$0xff] %v30_v4  ;;  %p71_p5 = scmp.ne.s32.totalorder %s40_s17, %s70_s18  ;;  %p76_p7 = scmp.lt.s32.totalorder %s70_s18, %s70_s18 }
  0x12   :  { %p77_p8 = por %p76_p7, %p75_p6 }
  0x14   :  { %p78_p9 = pnand %p77_p8, %p71_p5 }
  0x16   :  { %81 = shalt.err (!%p78_p9)
}
  0x17   :  { %42 = dma.vmem_to_hbm [thread:$0]  %s40_s17, 256, %s122_s2, [#allocation5]  }
  0x18   :  { %92 = dma.done.wait [#allocation5], 256  }
  0x19   :  { %93 = vsyncadd [#allocation5], 4294967040 }
  0x1a   :  { %46 = vsyncpa [#allocation4], 1 }
  0x1b   :  { %47 = vsyncpa [#allocation5], 1 }

</bundles_post_ra>
